<compile_context>
chip_gen: v7x
topology: tpu7x:2x2x1
jax: 0.10.0
libtpu: 0.0.40
codegen_flags: <defaults>
</compile_context>

<pallas_src>
import jax
import jax.numpy as jnp
import numpy as np
from jax.experimental import pallas as pl
from jax.experimental.pallas import tpu as pltpu

BN_EPS = 1e-5


def gated_gnn_kernel(
    x_ref,            # (B*N, dim_in)
    ee_ref,           # (B*E, B*N)   block-diag E_end
    es_ref,           # (B*E, B*N)   block-diag E_start
    eet_ref,          # (B*N, B*E)   block-diag E_end^T
    wcat1_ref,        # (dim_in,  4*dim_out)  columns = [Vi | Ui | Vj | Uj]
    bv1_ref, bu1_ref, # (1, dim_out)
    wcat2_ref,        # (dim_out, 4*dim_out)
    bv2_ref, bu2_ref, # (1, dim_out)
    wr_ref,           # (dim_in, dim_out)
    o_ref,            # (B*N, dim_out)
):
    D = wr_ref.shape[1]

    ee = ee_ref[...]
    es = es_ref[...]
    eet = eet_ref[...]

    def gconv(h, wcat, bv, bu):
        # Single lane-dense projection: P = [Vi h | Ui h | Vj h | Uj h],
        # shape (B*N, 4*D) with 4*D == 128 lanes.
        p = jnp.dot(h, wcat, preferred_element_type=jnp.float32)
        vix = p[:, 0:D]
        uix = p[:, D:2 * D]
        # E_end only touches the Vi columns; E_start touches the contiguous
        # [Vj | Uj] half — two incidence matmuls cover all edge-side products.
        a = jnp.dot(ee, vix, preferred_element_type=jnp.float32)            # (B*E, D)
        bm = jnp.dot(es, p[:, 2 * D:4 * D],
                     preferred_element_type=jnp.float32)                    # (B*E, 2D)
        x1 = jax.nn.sigmoid(a + bm[:, 0:D] + bv)                            # gate
        x2 = bm[:, D:2 * D]
        agg = jnp.dot(eet, x1 * x2, preferred_element_type=jnp.float32)     # (B*N, D)
        return uix + agg + bu

    def batchnorm(h):
        # torch.nn.BatchNorm1d in training mode (gamma=1, beta=0 at init):
        # per-channel mean / biased variance over all B*N rows.
        mean = jnp.mean(h, axis=0, keepdims=True)
        var = jnp.mean((h - mean) ** 2, axis=0, keepdims=True)
        return (h - mean) * jax.lax.rsqrt(var + BN_EPS)

    x = x_ref[...]

    # Layer 1: gconv -> BN -> ReLU
    h = jnp.maximum(
        batchnorm(gconv(x, wcat1_ref[...], bv1_ref[...], bu1_ref[...])), 0.0)
    # Layer 2: gconv -> BN
    h = batchnorm(gconv(h, wcat2_ref[...], bv2_ref[...], bu2_ref[...]))
    # Residual projection + final ReLU
    res = jnp.dot(x, wr_ref[...], preferred_element_type=jnp.float32)
    o_ref[...] = jnp.maximum(h + res, 0.0)


def gated_gnn_pallas(x, e_start, e_end, params):
    B, N, dim_in = x.shape
    dim_out = params["wui1"].shape[1]

    # Fold batch into the M dimension.
    x_flat = x.reshape(B * N, dim_in)

    # Block-diagonal incidence operators: one matmul serves all batches.
    eye_b = jnp.eye(B, dtype=jnp.float32)
    ee_blk = jnp.kron(eye_b, e_end)        # (B*E, B*N)
    es_blk = jnp.kron(eye_b, e_start)      # (B*E, B*N)
    eet_blk = ee_blk.T                     # (B*N, B*E)

    # Concatenate the four projections per layer into one 4*dim_out (=128)
    # wide weight. Column order: [Vi | Ui | Vj | Uj].
    wcat1 = jnp.concatenate(
        [params["wvi1"], params["wui1"], params["wvj1"], params["wuj1"]], axis=1)
    wcat2 = jnp.concatenate(
        [params["wvi2"], params["wui2"], params["wvj2"], params["wuj2"]], axis=1)

    vmem = pl.BlockSpec(memory_space=pltpu.MemorySpace.VMEM)
    args = (
        x_flat, ee_blk, es_blk, eet_blk,
        wcat1, params["bv1"], params["bu1"],
        wcat2, params["bv2"], params["bu2"],
        params["wr"],
    )
    out_flat = pl.pallas_call(
        gated_gnn_kernel,
        out_shape=jax.ShapeDtypeStruct((B * N, dim_out), jnp.float32),
        in_specs=[vmem] * len(args),
        out_specs=vmem,
    )(*args)
    return out_flat.reshape(B, N, dim_out)


def gated_gnn_reference(x, e_start, e_end, params):
    """Pure-JAX mirror of the torch forward (training-mode BatchNorm1d)."""
    def bn(h):
        mean = jnp.mean(h, axis=(0, 1), keepdims=True)
        var = jnp.mean((h - mean) ** 2, axis=(0, 1), keepdims=True)
        return (h - mean) / jnp.sqrt(var + BN_EPS)

    def gconv(h, wvi, wvj, wui, wuj, bv, bu):
        Vix = h @ wvi
        Vjx = h @ wvj
        x1 = jax.nn.sigmoid(
            jnp.einsum("en,bnd->bed", e_end, Vix)
            + jnp.einsum("en,bnd->bed", e_start, Vjx) + bv)
        x2 = jnp.einsum("en,bnd->bed", e_start, h @ wuj)
        return h @ wui + jnp.einsum("ne,bed->bnd", e_end.T, x1 * x2) + bu

    h = jax.nn.relu(bn(gconv(x, params["wvi1"], params["wvj1"], params["wui1"],
                             params["wuj1"], params["bv1"], params["bu1"])))
    h = bn(gconv(h, params["wvi2"], params["wvj2"], params["wui2"],
                 params["wuj2"], params["bv2"], params["bu2"]))
    return jax.nn.relu(h + x @ params["wr"])


def init_params(key, dim_in, dim_out):
    # Mirrors init_weights_OurConvNetcell: uniform(-scale, scale) with
    # scale = sqrt(2/dim_in) for layer-1 + R, sqrt(2/dim_out) for layer-2;
    # gate/update biases start at zero. Weights stored pre-transposed
    # as (in, out) so the kernel does x @ W.
    s1 = np.sqrt(2.0 / dim_in)
    s2 = np.sqrt(2.0 / dim_out)
    ks = jax.random.split(key, 9)
    u = lambda k, shape, s: jax.random.uniform(k, shape, jnp.float32, -s, s)
    return {
        "wvi1": u(ks[0], (dim_in, dim_out), s1),
        "wvj1": u(ks[1], (dim_in, dim_out), s1),
        "wui1": u(ks[2], (dim_in, dim_out), s1),
        "wuj1": u(ks[3], (dim_in, dim_out), s1),
        "bv1": jnp.zeros((1, dim_out), jnp.float32),
        "bu1": jnp.zeros((1, dim_out), jnp.float32),
        "wvi2": u(ks[4], (dim_out, dim_out), s2),
        "wvj2": u(ks[5], (dim_out, dim_out), s2),
        "wui2": u(ks[6], (dim_out, dim_out), s2),
        "wuj2": u(ks[7], (dim_out, dim_out), s2),
        "bv2": jnp.zeros((1, dim_out), jnp.float32),
        "bu2": jnp.zeros((1, dim_out), jnp.float32),
        "wr": u(ks[8], (dim_in, dim_out), s1),
    }


if __name__ == "__main__":
    B, N, E = 2, 8, 16
    dim_in, dim_out = 8, 32

    key = jax.random.PRNGKey(0)
    k_x, k_s, k_e, k_p = jax.random.split(key, 4)

    x = jax.random.normal(k_x, (B, N, dim_in), jnp.float32)
    # Dense edge-incidence matrices: each edge has one start and one end node.
    start_idx = jax.random.randint(k_s, (E,), 0, N)
    end_idx = jax.random.randint(k_e, (E,), 0, N)
    e_start = jax.nn.one_hot(start_idx, N, dtype=jnp.float32)   # (E, N)
    e_end = jax.nn.one_hot(end_idx, N, dtype=jnp.float32)       # (E, N)

    params = init_params(k_p, dim_in, dim_out)

    out = gated_gnn_pallas(x, e_start, e_end, params)
    out = jax.block_until_ready(out)

    ref = gated_gnn_reference(x, e_start, e_end, params)
    np.testing.assert_allclose(np.asarray(out), np.asarray(ref),
                               rtol=1e-4, atol=1e-4)
    print("KERNEL_OK")
</pallas_src>

<mosaic_0001>
module attributes {stable_mosaic.version = 11 : i64} {
  func.func @gated_gnn_kernel(%arg0: memref<16x8xf32, #tpu.memory_space<vmem>>, %arg1: memref<32x16xf32, #tpu.memory_space<vmem>>, %arg2: memref<32x16xf32, #tpu.memory_space<vmem>>, %arg3: memref<16x32xf32, #tpu.memory_space<vmem>>, %arg4: memref<8x128xf32, #tpu.memory_space<vmem>>, %arg5: memref<1x32xf32, #tpu.memory_space<vmem>>, %arg6: memref<1x32xf32, #tpu.memory_space<vmem>>, %arg7: memref<32x128xf32, #tpu.memory_space<vmem>>, %arg8: memref<1x32xf32, #tpu.memory_space<vmem>>, %arg9: memref<1x32xf32, #tpu.memory_space<vmem>>, %arg10: memref<8x32xf32, #tpu.memory_space<vmem>>, %arg11: memref<16x32xf32, #tpu.memory_space<vmem>>) attributes {dimension_semantics = [], scalar_prefetch = 0 : i64, scratch_operands = 0 : i64, tpu.core_type = #tpu.core_type<tc>} {
    %c0 = arith.constant 0 : index
    %c0_0 = arith.constant 0 : index
    %0 = vector.load %arg1[%c0, %c0_0] : memref<32x16xf32, #tpu.memory_space<vmem>>, vector<32x16xf32>
    %c0_1 = arith.constant 0 : index
    %c0_2 = arith.constant 0 : index
    %1 = vector.load %arg2[%c0_1, %c0_2] : memref<32x16xf32, #tpu.memory_space<vmem>>, vector<32x16xf32>
    %c0_3 = arith.constant 0 : index
    %c0_4 = arith.constant 0 : index
    %2 = vector.load %arg3[%c0_3, %c0_4] : memref<16x32xf32, #tpu.memory_space<vmem>>, vector<16x32xf32>
    %c0_5 = arith.constant 0 : index
    %c0_6 = arith.constant 0 : index
    %3 = vector.load %arg0[%c0_5, %c0_6] : memref<16x8xf32, #tpu.memory_space<vmem>>, vector<16x8xf32>
    %c0_7 = arith.constant 0 : index
    %c0_8 = arith.constant 0 : index
    %4 = vector.load %arg4[%c0_7, %c0_8] : memref<8x128xf32, #tpu.memory_space<vmem>>, vector<8x128xf32>
    %c0_9 = arith.constant 0 : index
    %c0_10 = arith.constant 0 : index
    %5 = vector.load %arg5[%c0_9, %c0_10] : memref<1x32xf32, #tpu.memory_space<vmem>>, vector<1x32xf32>
    %c0_11 = arith.constant 0 : index
    %c0_12 = arith.constant 0 : index
    %6 = vector.load %arg6[%c0_11, %c0_12] : memref<1x32xf32, #tpu.memory_space<vmem>>, vector<1x32xf32>
    %cst = arith.constant dense<0.000000e+00> : vector<16x128xf32>
    %7 = tpu.matmul %3, %4, %cst {dimension_numbers = #tpu.dot_dimension_numbers<[1], [0], [0], [1], [0, 0, 1, 1], [], []>} : vector<16x8xf32>, vector<8x128xf32>, vector<16x128xf32> -> vector<16x128xf32>
    %8 = vector.extract_strided_slice %7 {offsets = [0, 0], sizes = [16, 32], strides = [1, 1]} : vector<16x128xf32> to vector<16x32xf32>
    %9 = vector.extract_strided_slice %7 {offsets = [0, 32], sizes = [16, 32], strides = [1, 1]} : vector<16x128xf32> to vector<16x32xf32>
    %cst_13 = arith.constant dense<0.000000e+00> : vector<32x32xf32>
    %10 = tpu.matmul %0, %8, %cst_13 {dimension_numbers = #tpu.dot_dimension_numbers<[1], [0], [0], [1], [0, 0, 1, 1], [], []>} : vector<32x16xf32>, vector<16x32xf32>, vector<32x32xf32> -> vector<32x32xf32>
    %11 = vector.extract_strided_slice %7 {offsets = [0, 64], sizes = [16, 64], strides = [1, 1]} : vector<16x128xf32> to vector<16x64xf32>
    %cst_14 = arith.constant dense<0.000000e+00> : vector<32x64xf32>
    %12 = tpu.matmul %1, %11, %cst_14 {dimension_numbers = #tpu.dot_dimension_numbers<[1], [0], [0], [1], [0, 0, 1, 1], [], []>} : vector<32x16xf32>, vector<16x64xf32>, vector<32x64xf32> -> vector<32x64xf32>
    %13 = vector.extract_strided_slice %12 {offsets = [0, 0], sizes = [32, 32], strides = [1, 1]} : vector<32x64xf32> to vector<32x32xf32>
    %14 = arith.addf %10, %13 : vector<32x32xf32>
    %15 = vector.broadcast %5 : vector<1x32xf32> to vector<32x32xf32>
    %16 = arith.addf %14, %15 : vector<32x32xf32>
    %17 = arith.negf %16 : vector<32x32xf32>
    %18 = math.exp %17 : vector<32x32xf32>
    %cst_15 = arith.constant 1.000000e+00 : f32
    %19 = vector.broadcast %cst_15 : f32 to vector<32x32xf32>
    %20 = arith.addf %19, %18 : vector<32x32xf32>
    %21 = arith.divf %19, %20 : vector<32x32xf32>
    %22 = vector.extract_strided_slice %12 {offsets = [0, 32], sizes = [32, 32], strides = [1, 1]} : vector<32x64xf32> to vector<32x32xf32>
    %23 = arith.mulf %21, %22 : vector<32x32xf32>
    %cst_16 = arith.constant dense<0.000000e+00> : vector<16x32xf32>
    %24 = tpu.matmul %2, %23, %cst_16 {dimension_numbers = #tpu.dot_dimension_numbers<[1], [0], [0], [1], [0, 0, 1, 1], [], []>} : vector<16x32xf32>, vector<32x32xf32>, vector<16x32xf32> -> vector<16x32xf32>
    %25 = arith.addf %9, %24 : vector<16x32xf32>
    %26 = vector.broadcast %6 : vector<1x32xf32> to vector<16x32xf32>
    %27 = arith.addf %25, %26 : vector<16x32xf32>
    %cst_17 = arith.constant dense<0.000000e+00> : vector<32xf32>
    %28 = vector.multi_reduction <add>, %27, %cst_17 [0] : vector<16x32xf32> to vector<32xf32>
    %29 = vector.shape_cast %28 : vector<32xf32> to vector<1x32xf32>
    %cst_18 = arith.constant 1.600000e+01 : f32
    %30 = vector.broadcast %cst_18 : f32 to vector<1x32xf32>
    %31 = arith.divf %29, %30 : vector<1x32xf32>
    %32 = vector.broadcast %31 : vector<1x32xf32> to vector<16x32xf32>
    %33 = arith.subf %27, %32 : vector<16x32xf32>
    %34 = arith.mulf %33, %33 : vector<16x32xf32>
    %cst_19 = arith.constant dense<0.000000e+00> : vector<32xf32>
    %35 = vector.multi_reduction <add>, %34, %cst_19 [0] : vector<16x32xf32> to vector<32xf32>
    %36 = vector.shape_cast %35 : vector<32xf32> to vector<1x32xf32>
    %cst_20 = arith.constant 1.600000e+01 : f32
    %37 = vector.broadcast %cst_20 : f32 to vector<1x32xf32>
    %38 = arith.divf %36, %37 : vector<1x32xf32>
    %39 = vector.broadcast %31 : vector<1x32xf32> to vector<16x32xf32>
    %40 = arith.subf %27, %39 : vector<16x32xf32>
    %cst_21 = arith.constant 9.99999974E-6 : f32
    %41 = vector.broadcast %cst_21 : f32 to vector<1x32xf32>
    %42 = arith.addf %38, %41 : vector<1x32xf32>
    %43 = math.rsqrt %42 : vector<1x32xf32>
    %44 = vector.broadcast %43 : vector<1x32xf32> to vector<16x32xf32>
    %45 = arith.mulf %40, %44 : vector<16x32xf32>
    %cst_22 = arith.constant 0.000000e+00 : f32
    %46 = vector.broadcast %cst_22 : f32 to vector<16x32xf32>
    %47 = arith.maximumf %45, %46 : vector<16x32xf32>
    %c0_23 = arith.constant 0 : index
    %c0_24 = arith.constant 0 : index
    %48 = vector.load %arg7[%c0_23, %c0_24] : memref<32x128xf32, #tpu.memory_space<vmem>>, vector<32x128xf32>
    %c0_25 = arith.constant 0 : index
    %c0_26 = arith.constant 0 : index
    %49 = vector.load %arg8[%c0_25, %c0_26] : memref<1x32xf32, #tpu.memory_space<vmem>>, vector<1x32xf32>
    %c0_27 = arith.constant 0 : index
    %c0_28 = arith.constant 0 : index
    %50 = vector.load %arg9[%c0_27, %c0_28] : memref<1x32xf32, #tpu.memory_space<vmem>>, vector<1x32xf32>
    %cst_29 = arith.constant dense<0.000000e+00> : vector<16x128xf32>
    %51 = tpu.matmul %47, %48, %cst_29 {dimension_numbers = #tpu.dot_dimension_numbers<[1], [0], [0], [1], [0, 0, 1, 1], [], []>} : vector<16x32xf32>, vector<32x128xf32>, vector<16x128xf32> -> vector<16x128xf32>
    %52 = vector.extract_strided_slice %51 {offsets = [0, 0], sizes = [16, 32], strides = [1, 1]} : vector<16x128xf32> to vector<16x32xf32>
    %53 = vector.extract_strided_slice %51 {offsets = [0, 32], sizes = [16, 32], strides = [1, 1]} : vector<16x128xf32> to vector<16x32xf32>
    %cst_30 = arith.constant dense<0.000000e+00> : vector<32x32xf32>
    %54 = tpu.matmul %0, %52, %cst_30 {dimension_numbers = #tpu.dot_dimension_numbers<[1], [0], [0], [1], [0, 0, 1, 1], [], []>} : vector<32x16xf32>, vector<16x32xf32>, vector<32x32xf32> -> vector<32x32xf32>
    %55 = vector.extract_strided_slice %51 {offsets = [0, 64], sizes = [16, 64], strides = [1, 1]} : vector<16x128xf32> to vector<16x64xf32>
    %cst_31 = arith.constant dense<0.000000e+00> : vector<32x64xf32>
    %56 = tpu.matmul %1, %55, %cst_31 {dimension_numbers = #tpu.dot_dimension_numbers<[1], [0], [0], [1], [0, 0, 1, 1], [], []>} : vector<32x16xf32>, vector<16x64xf32>, vector<32x64xf32> -> vector<32x64xf32>
    %57 = vector.extract_strided_slice %56 {offsets = [0, 0], sizes = [32, 32], strides = [1, 1]} : vector<32x64xf32> to vector<32x32xf32>
    %58 = arith.addf %54, %57 : vector<32x32xf32>
    %59 = vector.broadcast %49 : vector<1x32xf32> to vector<32x32xf32>
    %60 = arith.addf %58, %59 : vector<32x32xf32>
    %61 = arith.negf %60 : vector<32x32xf32>
    %62 = math.exp %61 : vector<32x32xf32>
    %cst_32 = arith.constant 1.000000e+00 : f32
    %63 = vector.broadcast %cst_32 : f32 to vector<32x32xf32>
    %64 = arith.addf %63, %62 : vector<32x32xf32>
    %65 = arith.divf %63, %64 : vector<32x32xf32>
    %66 = vector.extract_strided_slice %56 {offsets = [0, 32], sizes = [32, 32], strides = [1, 1]} : vector<32x64xf32> to vector<32x32xf32>
    %67 = arith.mulf %65, %66 : vector<32x32xf32>
    %cst_33 = arith.constant dense<0.000000e+00> : vector<16x32xf32>
    %68 = tpu.matmul %2, %67, %cst_33 {dimension_numbers = #tpu.dot_dimension_numbers<[1], [0], [0], [1], [0, 0, 1, 1], [], []>} : vector<16x32xf32>, vector<32x32xf32>, vector<16x32xf32> -> vector<16x32xf32>
    %69 = arith.addf %53, %68 : vector<16x32xf32>
    %70 = vector.broadcast %50 : vector<1x32xf32> to vector<16x32xf32>
    %71 = arith.addf %69, %70 : vector<16x32xf32>
    %cst_34 = arith.constant dense<0.000000e+00> : vector<32xf32>
    %72 = vector.multi_reduction <add>, %71, %cst_34 [0] : vector<16x32xf32> to vector<32xf32>
    %73 = vector.shape_cast %72 : vector<32xf32> to vector<1x32xf32>
    %cst_35 = arith.constant 1.600000e+01 : f32
    %74 = vector.broadcast %cst_35 : f32 to vector<1x32xf32>
    %75 = arith.divf %73, %74 : vector<1x32xf32>
    %76 = vector.broadcast %75 : vector<1x32xf32> to vector<16x32xf32>
    %77 = arith.subf %71, %76 : vector<16x32xf32>
    %78 = arith.mulf %77, %77 : vector<16x32xf32>
    %cst_36 = arith.constant dense<0.000000e+00> : vector<32xf32>
    %79 = vector.multi_reduction <add>, %78, %cst_36 [0] : vector<16x32xf32> to vector<32xf32>
    %80 = vector.shape_cast %79 : vector<32xf32> to vector<1x32xf32>
    %cst_37 = arith.constant 1.600000e+01 : f32
    %81 = vector.broadcast %cst_37 : f32 to vector<1x32xf32>
    %82 = arith.divf %80, %81 : vector<1x32xf32>
    %83 = vector.broadcast %75 : vector<1x32xf32> to vector<16x32xf32>
    %84 = arith.subf %71, %83 : vector<16x32xf32>
    %cst_38 = arith.constant 9.99999974E-6 : f32
    %85 = vector.broadcast %cst_38 : f32 to vector<1x32xf32>
    %86 = arith.addf %82, %85 : vector<1x32xf32>
    %87 = math.rsqrt %86 : vector<1x32xf32>
    %88 = vector.broadcast %87 : vector<1x32xf32> to vector<16x32xf32>
    %89 = arith.mulf %84, %88 : vector<16x32xf32>
    %c0_39 = arith.constant 0 : index
    %c0_40 = arith.constant 0 : index
    %90 = vector.load %arg10[%c0_39, %c0_40] : memref<8x32xf32, #tpu.memory_space<vmem>>, vector<8x32xf32>
    %cst_41 = arith.constant dense<0.000000e+00> : vector<16x32xf32>
    %91 = tpu.matmul %3, %90, %cst_41 {dimension_numbers = #tpu.dot_dimension_numbers<[1], [0], [0], [1], [0, 0, 1, 1], [], []>} : vector<16x8xf32>, vector<8x32xf32>, vector<16x32xf32> -> vector<16x32xf32>
    %92 = arith.addf %89, %91 : vector<16x32xf32>
    %cst_42 = arith.constant 0.000000e+00 : f32
    %93 = vector.broadcast %cst_42 : f32 to vector<16x32xf32>
    %94 = arith.maximumf %92, %93 : vector<16x32xf32>
    %c0_43 = arith.constant 0 : index
    %c0_44 = arith.constant 0 : index
    %95 = vector.load %arg11[%c0_43, %c0_44] : memref<16x32xf32, #tpu.memory_space<vmem>>, vector<16x32xf32>
    tpu.vector_store %arg11[%c0_43, %c0_44], %94 {strides = array<i32>} : memref<16x32xf32, #tpu.memory_space<vmem>>, vector<16x32xf32>,
    return
  }
}

</mosaic_0001>

<bundles_post_ra>
// kernel: tpu_custom_call.1
= control target key start
LH: loop header
LB: loop body
LE: loop exit
PB: predicated region body
PF: predicated region fallthrough
CT: control target
= control target key end

     0   :  { %vm54_vm0 = vcmask 64512   ;;  %s1642_s0 = inlined_call_operand.vmem [shape: f32[16,8], index: 0, kind: input, shape index: {}]   ;;  %s1643_s1 = inlined_call_operand.vmem [shape: f32[32,16], index: 1, kind: input, shape index: {}]   ;;  %s1644_s2 = inlined_call_operand.vmem [shape: f32[32,16], index: 2, kind: input, shape index: {}]   ;;  %s1645_s3 = inlined_call_operand.vmem [shape: f32[16,32], index: 3, kind: input, shape index: {}]   ;;  %s1646_s4 = inlined_call_operand.vmem [shape: f32[8,128], index: 4, kind: input, shape index: {}]   ;;  %s1647_s5 = inlined_call_operand.vmem [shape: f32[1,32], index: 5, kind: input, shape index: {}]   ;;  %s1648_s6 = inlined_call_operand.vmem [shape: f32[1,32], index: 6, kind: input, shape index: {}]   ;;  %s1649_s7 = inlined_call_operand.vmem [shape: f32[32,128], index: 7, kind: input, shape index: {}]   ;;  %s1650_s8 = inlined_call_operand.vmem [shape: f32[1,32], index: 8, kind: input, shape index: {}]   ;;  %s1651_s9 = inlined_call_operand.vmem [shape: f32[1,32], index: 9, kind: input, shape index: {}]   ;;  %s1652_s10 = inlined_call_operand.vmem [shape: f32[8,32], index: 10, kind: input, shape index: {}]   ;;  %s1653_s11 = inlined_call_operand.hbm [shape: f32[16,32], index: 11, kind: output, shape index: {}]  }
   0x1   :  { %v51_v0 = vld [vmem:[%s1646_s4] sm:$0xff]  ;;  %v1449_v2 = vld [vmem:[%s1642_s0 + $0x8] sm:$0xff] }
   0x2   :  { %v1444_v1 = vld [vmem:[%s1642_s0] sm:$0xff]  ;;  %1173 = vmatprep.subr.mxu0 %v51_v0 }
   0x3   :  { %1175 = vmatprep.mubr.msk.f32.mxu0 %vm54_vm0, %v1444_v1 }
   0x4   :  { %16 = vsyncpa [#allocation3], 0  ;;  %1174 = vmatpush3.msra.mxu0 %v51_v0  ;;  %v1458_v3 = vld [vmem:[%s1644_s2] sm:$0xff]  ;;  %vm144_vm1 = vcmask 130048   ;;  %s1372_s0 = smov 64   ;;  %v1481_v9 = vld [vmem:[%s1643_s1 + $0x8] sm:$0xff] }
   0x5   :  { %1176 = vmatmul.mubr.msk.f32.vlgmr.msra.gmra.mrb[0].mxu0 %vm54_vm0, %v1449_v2  ;;  %v1463_v4 = vld [vmem:[%s1643_s1] sm:$0xff]  ;;  %1182 = vmatprep.mubr.msk.f32.mxu1 %vm144_vm1, %v1458_v3  ;;  %v1486_v10 = vld [vmem:[%s1643_s1 + $0x10] sm:$0xff]  ;;  %v1495_v11 = vld [vmem:[%s1643_s1 + $0x18] sm:$0xff]  ;;  %vm393_vm2 = vcmask 261120   ;;  %s1374_s4 = smov 32   ;;  %vm495_vm3 = vcmask 523520  }
   0x6   :  { %1192 = vmatprep.mubr.msk.f32.mxu0 %vm144_vm1, %v1463_v4  ;;  %v1502_v16 = vld [vmem:[%s1644_s2 + $0x8] sm:$0xff]  ;;  %v1507_v17 = vld [vmem:[%s1644_s2 + $0x10] sm:$0xff]  ;;  %v1516_v18 = vld [vmem:[%s1644_s2 + $0x18] sm:$0xff]  ;;  %s1373_s2 = smov 96  }
   0x7   :  { %v1523_v23 = vld [vmem:[%s1645_s3] sm:$0xff]  ;;  %v1537_v63 = vld [vmem:[%s1645_s3 + $0x8] sm:$0xff] }
   0x8   :  { %v1097_v32 = vld [vmem:[%s1647_s5] ss:$0 sm:$0xff] }
  0xd8   :  { %v1469_v5 = vpop.f32.mrb[0].mxu0 }
  0xd9   :  { %v1471_v6 = vpop.f32.mrb[1].mxu0 }
  0xda   :  { %v1260_v7 = vpack.c.bf16 %v1469_v5, %v1471_v6  ;;  %v1302_v8 = vpack.i.bf16 %v1469_v5, %v1471_v6 }
  0xdc   :  { %1303 = vrot.lane.b32.xlu0 %v1302_v8, %s1372_s0  ;;  %1261 = vmatprep.subr.bf16.mxu0 %v1260_v7  ;;  %v1104_v8 = vld [vmem:[%s1648_s6] ss:$0 sm:$0xff] }
  0xdd   :  { %1263 = vmatpush3.bf16.msra.mxu0 %v1260_v7 }
  0xe0   :  { %1193 = vmatmul.mubr.msk.f32.vlgmr.msra.gmra.mrb[2].mxu0 %vm144_vm1, %v1481_v9 }
  0xe1   :  { %1195 = vmatprep.mubr.msk.f32.mxu0 %vm144_vm1, %v1486_v10 }
  0xe4   :  { %1196 = vmatmul.mubr.msk.f32.gmra.mrb[4].mxu0 %vm144_vm1, %v1495_v11 }
 0x14e   :  { %v1304_v12 = vpop.permute.xlu0 %1303 }
 0x14f   :  { %v1306_v13 = vunpack.i.h.bf16 %v1304_v12  ;;  %v1305_v14 = vunpack.i.l.bf16 %v1304_v12  ;;  %v527_v12 = vld [vmem:[%s1649_s7] sm:$0xff] }
 0x151   :  { %v1256_v15 = vpack.c.bf16 %v1306_v13, %v1305_v14  ;;  %v529_v13 = vld [vmem:[%s1649_s7 + $0x10] sm:$0xff] }
 0x153   :  { %1257 = vmatprep.subr.bf16.mxu1 %v1256_v15 }
 0x154   :  { %1259 = vmatpush3.bf16.msra.mxu1 %v1256_v15  ;;  %v530_v15 = vld [vmem:[%s1649_s7 + $0x18] sm:$0xff] }
 0x157   :  { %1183 = vmatmul.mubr.msk.f32.vlgmr.msra.gmra.mrb[0].mxu1 %vm144_vm1, %v1502_v16 }
 0x158   :  { %1185 = vmatprep.mubr.msk.f32.mxu1 %vm144_vm1, %v1507_v17 }
 0x15b   :  { %1186 = vmatmul.mubr.msk.f32.gmra.mrb[2].mxu1 %vm144_vm1, %v1516_v18 }
 0x15c   :  { %1206 = vmatprep.mubr.msk.f32.mxu1 %vm393_vm2, %v1523_v23 }
 0x1b3   :  { %v1194_v19 = vpop.f32.mrb[2].mxu0 }
 0x1b4   :  { %v320_v20 = vpop.f32.mrb[3].mxu0 }
 0x1b7   :  { %v1197_v21 = vpop.f32.mrb[4].mxu0 }
 0x1b8   :  { %v330_v22 = vpop.f32.mrb[5].mxu0 }
 0x22a   :  { %v1184_v24 = vpop.f32.mrb[0].mxu1 }
 0x22b   :  { %v326_v25 = vadd.f32 %v1194_v19, %v1184_v24  ;;  %379 = vrot.lane.b32.xlu1 %v1184_v24, %s1373_s2  ;;  %v223_v26 = vpop.f32.mrb[1].mxu1  ;;  %v1276_v19 = vpack.c.bf16 %v530_v15, %v529_v13  ;;  %v1115_v15 = vld [vmem:[%s1650_s8] ss:$0 sm:$0xff] }
 0x22c   :  { %v321_v27 = vadd.f32 %v320_v20, %v223_v26  ;;  %377 = vrot.lane.b32.xlu0 %v223_v26, %s1373_s2 }
 0x22d   :  { %v346_v33 = vadd.f32 %v1097_v32, %v326_v25 }
 0x22e   :  { %v1187_v28 = vpop.f32.mrb[2].mxu1  ;;  %v345_v34 = vadd.f32 %v1097_v32, %v321_v27 }
 0x22f   :  { %v336_v29 = vadd.f32 %v1197_v21, %v1187_v28  ;;  %v233_v30 = vpop.f32.mrb[3].mxu1  ;;  %v1099_v35 = vmul.f32 -1.442695, %v346_v33 }
 0x230   :  { %v331_v31 = vadd.f32 %v330_v22, %v233_v30  ;;  %383 = vrot.lane.b32.xlu0 %v1187_v28, %s1373_s2  ;;  %381 = vrot.lane.b32.xlu1 %v233_v30, %s1373_s2  ;;  %v1098_v37 = vmul.f32 -1.442695, %v345_v34 }
 0x231   :  { %v348_v36 = vadd.f32 %v1097_v32, %v336_v29  ;;  %1312 = vpow2.f32 %v1099_v35 }
 0x232   :  { %v347_v38 = vadd.f32 %v1097_v32, %v331_v31  ;;  %1314 = vpow2.f32 %v1098_v37 }
 0x233   :  { %v1101_v39 = vmul.f32 -1.442695, %v348_v36 }
 0x234   :  { %v1100_v40 = vmul.f32 -1.442695, %v347_v38 }
 0x235   :  { %1316 = vpow2.f32 %v1101_v39 }
 0x236   :  { %1318 = vpow2.f32 %v1100_v40 }
 0x23b   :  { %v1313_v41 = vpop.eup %1312 }
 0x23c   :  { %v1315_v42 = vpop.eup %1314  ;;  %v362_v43 = vadd.f32 1.0, %v1313_v41 }
 0x23d   :  { %v361_v45 = vadd.f32 1.0, %v1315_v42 }
 0x23e   :  { %1320 = vrcp.f32 %v362_v43 }
 0x23f   :  { %v1317_v44 = vpop.eup %1316  ;;  %1322 = vrcp.f32 %v361_v45 }
 0x240   :  { %v1319_v46 = vpop.eup %1318  ;;  %v364_v47 = vadd.f32 1.0, %v1317_v44 }
 0x241   :  { %v363_v48 = vadd.f32 1.0, %v1319_v46 }
 0x242   :  { %1324 = vrcp.f32 %v364_v47 }
 0x243   :  { %1326 = vrcp.f32 %v363_v48 }
 0x248   :  { %v1321_v49 = vpop.eup %1320 }
 0x249   :  { %v1323_v51 = vpop.eup %1322 }
 0x24c   :  { %v1325_v55 = vpop.eup %1324 }
 0x24d   :  { %v1327_v57 = vpop.eup %1326 }
 0x29d   :  { %v380_v50 = vpop.permute.xlu1 %379 }
 0x29e   :  { %v390_v52 = vmul.f32 %v1321_v49, %v380_v50  ;;  %v378_v53 = vpop.permute.xlu0 %377 }
 0x29f   :  { %v389_v54 = vmul.f32 %v1323_v51, %v378_v53 }
 0x2a1   :  { %v1264_v56 = vpack.c.bf16 %v390_v52, %v389_v54 }
 0x2a2   :  { %v384_v58 = vpop.permute.xlu0 %383  ;;  %v382_v59 = vpop.permute.xlu1 %381 }
 0x2a3   :  { %v392_v60 = vmul.f32 %v1325_v55, %v384_v58  ;;  %v391_v61 = vmul.f32 %v1327_v57, %v382_v59  ;;  %1265 = vmatprep.subr.bf16.mxu1 %v1264_v56 }
 0x2a4   :  { %1267 = vmatpush3.bf16.msra.mxu1 %v1264_v56 }
 0x2a5   :  { %v1268_v62 = vpack.c.bf16 %v392_v60, %v391_v61 }
 0x2a7   :  { %1269 = vmatprep.subr.bf16.mxu1 %v1268_v62 }
 0x2a8   :  { %1271 = vmatpush3.bf16.msra.mxu1 %v1268_v62 }
 0x2ab   :  { %1207 = vmatmul.mubr.msk.f32.vlgmr.msra.gmra.mrb[4].mxu1 %vm393_vm2, %v1537_v63 }
 0x2ac   :  { %1224 = vmatprep.mubr.msk.f32.mxu1 %vm144_vm1, %v1458_v3  ;;  %v528_v3 = vld [vmem:[%s1649_s7 + $0x8] sm:$0xff] }
 0x2ad   :  { %v1272_v14 = vpack.c.bf16 %v528_v3, %v527_v12 }
 0x2af   :  { %1273 = vmatprep.subr.bf16.mxu0 %v1272_v14 }
 0x2b0   :  { %1275 = vmatpush3.bf16.msra.mxu0 %v1272_v14 }
 0x2b1   :  { %1277 = vmatprep.subr.bf16.mxu0 %v1276_v19 }
 0x2b4   :  { %1279 = vmatpush3.bf16.msra.mxu0 %v1276_v19 }
 0x37e   :  { %v1208_v0 = vpop.f32.mrb[4].mxu1 }
 0x37f   :  { %479 = vrot.lane.b32.xlu0 %v1208_v0, %s1374_s4  ;;  %v466_v7 = vpop.f32.mrb[5].mxu1 }
 0x380   :  { %477 = vrot.lane.b32.xlu1 %v466_v7, %s1374_s4 }
 0x384   :  { %490 = vrot.lane.b32.xlu1 %v1104_v8, %s1374_s4 }
 0x3f1   :  { %v480_v20 = vpop.permute.xlu0 %479 }
 0x3f2   :  { %v478_v21 = vpop.permute.xlu1 %477  ;;  %v484_v22 = vadd.f32 %v1469_v5, %v480_v20 }
 0x3f3   :  { %v483_v24 = vadd.f32 %v478_v21, %v1471_v6 }
 0x3f6   :  { %v491_v25 = vpop.permute.xlu1 %490 }
 0x3f7   :  { %v493_v26 = vadd.f32 %v491_v25, %v483_v24  ;;  %v494_v27 = vadd.f32 %v491_v25, %v484_v22 }
 0x3f9   :  { %v496_v28 = vsel %vm495_vm3, %v493_v26, 0.0  ;;  %v497_v29 = vsel %vm495_vm3, %v494_v27, 0.0 }
 0x3fa   :  { %v498_v30 = vadd.f32 %v497_v29, %v496_v28 }
 0x3fc   :  { %v499_v31 = vrot.slane %v498_v30, 4 }
 0x3fe   :  { %v500_v32 = vadd.f32 %v499_v31, %v498_v30 }
 0x400   :  { %v501_v33 = vrot.slane %v500_v32, 2 }
 0x402   :  { %v502_v34 = vadd.f32 %v501_v33, %v500_v32 }
 0x404   :  { %v503_v35 = vrot.slane %v502_v34, 1 }
 0x406   :  { %v504_v36 = vadd.f32 %v503_v35, %v502_v34 }
 0x408   :  { %v506_v37 = vmul.f32 0.0625, %v504_v36 }
 0x40a   :  { %v507_v38 = vsub.f32 %v493_v26, %v506_v37  ;;  %v508_v5 = vsub.f32 %v494_v27, %v506_v37 }
 0x40c   :  { %v509_v39 = vmul.f32 %v507_v38, %v507_v38  ;;  %v510_v6 = vmul.f32 %v508_v5, %v508_v5 }
 0x40e   :  { %v511_v40 = vsel %vm495_vm3, %v509_v39, 0.0  ;;  %v512_v41 = vsel %vm495_vm3, %v510_v6, 0.0 }
 0x40f   :  { %v513_v42 = vadd.f32 %v512_v41, %v511_v40 }
 0x411   :  { %v514_v43 = vrot.slane %v513_v42, 4 }
 0x413   :  { %v515_v44 = vadd.f32 %v514_v43, %v513_v42 }
 0x415   :  { %v516_v45 = vrot.slane %v515_v44, 2 }
 0x417   :  { %v517_v46 = vadd.f32 %v516_v45, %v515_v44 }
 0x419   :  { %v518_v47 = vrot.slane %v517_v46, 1 }
 0x41b   :  { %v519_v48 = vadd.f32 %v518_v47, %v517_v46 }
 0x41d   :  { %v520_v49 = vmul.f32 0.0625, %v519_v48 }
 0x41f   :  { %v521_v50 = vadd.f32 1e-05, %v520_v49 }
 0x421   :  { %1328 = vrsqrt.f32 %v521_v50 }
 0x42b   :  { %v1329_v51 = vpop.eup %1328 }
 0x42c   :  { %v524_v52 = vmul.f32 %v1329_v51, %v508_v5  ;;  %v523_v53 = vmul.f32 %v1329_v51, %v507_v38  ;;  %v1122_v51 = vld [vmem:[%s1651_s9] ss:$0 sm:$0xff]  ;;  %s1375_s9 = smov [#allocation2]  }
 0x42d   :  { %s1076_s14 = sshll.u32 %s1375_s9, 4  ;;  %s1077_s14 = int_to_ptr.vmem [resolvable:$true] %s1076_s14 }
 0x42e   :  { %v526_v54 = vmax.f32 %v524_v52, 0.0  ;;  %v525_v55 = vmax.f32 %v523_v53, 0.0  ;;  %s1348_s15 = scalar_lea.vmem %s1077_s14, 256  ;;  %p1353_p1 = scmp.lt.s32.totalorder %s1077_s14, %s1077_s14 }
 0x42f   :  { %p1349_p0 = scmp.ne.s32.totalorder %s1077_s14, %s1348_s15  ;;  %p1354_p2 = scmp.lt.s32.totalorder %s1348_s15, %s1348_s15 }
 0x430   :  { %537 = vrot.lane.b32.xlu1 %v526_v54, %s1373_s2  ;;  %535 = vrot.lane.b32.xlu0 %v525_v55, %s1373_s2 }
 0x431   :  { %p1355_p3 = por %p1354_p2, %p1353_p1 }
 0x433   :  { %p1356_p4 = pnand %p1355_p3, %p1349_p0 }
 0x4a2   :  { %v538_v56 = vpop.permute.xlu1 %537  ;;  %v536_v57 = vpop.permute.xlu0 %535 }
 0x4a3   :  { %1217 = vmatprep.mubr.msk.f32.mxu0 %vm393_vm2, %v536_v57 }
 0x4a4   :  { %1218 = vmatmul.mubr.msk.f32.vlgmr.msra.gmra.mrb[6].mxu0 %vm393_vm2, %v538_v56 }
 0x4a5   :  { %1234 = vmatprep.mubr.msk.f32.mxu0 %vm144_vm1, %v1463_v4 }
 0x577   :  { %v1573_v58 = vpop.f32.mrb[6].mxu0 }
 0x578   :  { %v1575_v59 = vpop.f32.mrb[7].mxu0 }
 0x579   :  { %v1307_v60 = vpack.i.bf16 %v1573_v58, %v1575_v59  ;;  %v1284_v61 = vpack.c.bf16 %v1573_v58, %v1575_v59 }
 0x57b   :  { %1308 = vrot.lane.b32.xlu0 %v1307_v60, %s1372_s0  ;;  %1285 = vmatprep.subr.bf16.mxu0 %v1284_v61 }
 0x57c   :  { %1287 = vmatpush3.bf16.msra.mxu0 %v1284_v61 }
 0x57f   :  { %1235 = vmatmul.mubr.msk.f32.vlgmr.msra.gmra.mrb[8].mxu0 %vm144_vm1, %v1481_v9 }
 0x580   :  { %1237 = vmatprep.mubr.msk.f32.mxu0 %vm144_vm1, %v1486_v10 }
 0x583   :  { %1238 = vmatmul.mubr.msk.f32.gmra.mrb[10].mxu0 %vm144_vm1, %v1495_v11 }
 0x584   :  { %1253 = vmatprep.mubr.msk.f32.mxu0 %vm54_vm0, %v1444_v1 }
 0x5ed   :  { %v1309_v4 = vpop.permute.xlu0 %1308 }
 0x5ee   :  { %v1311_v62 = vunpack.i.h.bf16 %v1309_v4  ;;  %v1310_v0 = vunpack.i.l.bf16 %v1309_v4 }
 0x5f0   :  { %v1280_v7 = vpack.c.bf16 %v1311_v62, %v1310_v0 }
 0x5f2   :  { %1281 = vmatprep.subr.bf16.mxu1 %v1280_v7 }
 0x5f3   :  { %1283 = vmatpush3.bf16.msra.mxu1 %v1280_v7 }
 0x5f6   :  { %1225 = vmatmul.mubr.msk.f32.vlgmr.msra.gmra.mrb[6].mxu1 %vm144_vm1, %v1502_v16  ;;  %v973_v16 = vld [vmem:[%s1652_s10] sm:$0xff] }
 0x5f7   :  { %1227 = vmatprep.mubr.msk.f32.mxu1 %vm144_vm1, %v1507_v17  ;;  %1251 = vmatprep.subr.mxu0 %v973_v16 }
 0x5f8   :  { %1252 = vmatpush3.msra.mxu0 %v973_v16 }
 0x5f9   :  { %1254 = vmatmul.mubr.msk.f32.vlgmr.msra.gmra.mrb[12].mxu0 %vm54_vm0, %v1449_v2 }
 0x5fa   :  { %1228 = vmatmul.mubr.msk.f32.gmra.mrb[8].mxu1 %vm144_vm1, %v1516_v18 }
 0x5fb   :  { %1248 = vmatprep.mubr.msk.f32.mxu1 %vm393_vm2, %v1523_v23 }
 0x652   :  { %v1236_v9 = vpop.f32.mrb[8].mxu0 }
 0x653   :  { %v777_v1 = vpop.f32.mrb[9].mxu0 }
 0x656   :  { %v1239_v10 = vpop.f32.mrb[10].mxu0 }
 0x657   :  { %v787_v11 = vpop.f32.mrb[11].mxu0 }
 0x6c9   :  { %v1226_v8 = vpop.f32.mrb[6].mxu1 }
 0x6ca   :  { %v783_v12 = vadd.f32 %v1236_v9, %v1226_v8  ;;  %836 = vrot.lane.b32.xlu0 %v1226_v8, %s1373_s2  ;;  %v692_v3 = vpop.f32.mrb[7].mxu1 }
 0x6cb   :  { %v778_v17 = vadd.f32 %v777_v1, %v692_v3  ;;  %834 = vrot.lane.b32.xlu1 %v692_v3, %s1373_s2 }
 0x6cc   :  { %v803_v19 = vadd.f32 %v1115_v15, %v783_v12  ;;  %v1255_v47 = vpop.f32.mrb[12].mxu0 }
 0x6cd   :  { %v1229_v18 = vpop.f32.mrb[8].mxu1  ;;  %v802_v20 = vadd.f32 %v1115_v15, %v778_v17  ;;  %v1040_v48 = vpop.f32.mrb[13].mxu0 }
 0x6ce   :  { %v793_v23 = vadd.f32 %v1239_v10, %v1229_v18  ;;  %840 = vrot.lane.b32.xlu0 %v1229_v18, %s1373_s2  ;;  %v702_v13 = vpop.f32.mrb[9].mxu1  ;;  %v1117_v21 = vmul.f32 -1.442695, %v803_v19 }
 0x6cf   :  { %v788_v14 = vadd.f32 %v787_v11, %v702_v13  ;;  %838 = vrot.lane.b32.xlu1 %v702_v13, %s1373_s2  ;;  %v1116_v24 = vmul.f32 -1.442695, %v802_v20 }
 0x6d0   :  { %v805_v22 = vadd.f32 %v1115_v15, %v793_v23  ;;  %1330 = vpow2.f32 %v1117_v21 }
 0x6d1   :  { %v804_v25 = vadd.f32 %v1115_v15, %v788_v14  ;;  %1332 = vpow2.f32 %v1116_v24 }
 0x6d2   :  { %v1119_v26 = vmul.f32 -1.442695, %v805_v22 }
 0x6d3   :  { %v1118_v2 = vmul.f32 -1.442695, %v804_v25 }
 0x6d4   :  { %1334 = vpow2.f32 %v1119_v26 }
 0x6d5   :  { %1336 = vpow2.f32 %v1118_v2 }
 0x6da   :  { %v1331_v27 = vpop.eup %1330 }
 0x6db   :  { %v1333_v28 = vpop.eup %1332  ;;  %v819_v29 = vadd.f32 1.0, %v1331_v27 }
 0x6dc   :  { %v818_v31 = vadd.f32 1.0, %v1333_v28 }
 0x6dd   :  { %1338 = vrcp.f32 %v819_v29 }
 0x6de   :  { %v1335_v30 = vpop.eup %1334  ;;  %1340 = vrcp.f32 %v818_v31 }
 0x6df   :  { %v1337_v32 = vpop.eup %1336  ;;  %v821_v33 = vadd.f32 1.0, %v1335_v30 }
 0x6e0   :  { %v820_v34 = vadd.f32 1.0, %v1337_v32 }
 0x6e1   :  { %1342 = vrcp.f32 %v821_v33 }
 0x6e2   :  { %1344 = vrcp.f32 %v820_v34 }
 0x6e7   :  { %v1339_v35 = vpop.eup %1338 }
 0x6e8   :  { %v1341_v37 = vpop.eup %1340 }
 0x6eb   :  { %v1343_v6 = vpop.eup %1342 }
 0x6ec   :  { %v1345_v42 = vpop.eup %1344 }
 0x73c   :  { %v837_v36 = vpop.permute.xlu0 %836 }
 0x73d   :  { %v847_v38 = vmul.f32 %v1339_v35, %v837_v36  ;;  %v835_v5 = vpop.permute.xlu1 %834 }
 0x73e   :  { %v846_v39 = vmul.f32 %v1341_v37, %v835_v5 }
 0x740   :  { %v1288_v40 = vpack.c.bf16 %v847_v38, %v846_v39  ;;  %v841_v41 = vpop.permute.xlu0 %840 }
 0x741   :  { %v849_v43 = vmul.f32 %v1343_v6, %v841_v41  ;;  %v839_v44 = vpop.permute.xlu1 %838 }
 0x742   :  { %v848_v45 = vmul.f32 %v1345_v42, %v839_v44  ;;  %1289 = vmatprep.subr.bf16.mxu1 %v1288_v40 }
 0x743   :  { %1291 = vmatpush3.bf16.msra.mxu1 %v1288_v40 }
 0x744   :  { %v1292_v46 = vpack.c.bf16 %v849_v43, %v848_v45 }
 0x746   :  { %1293 = vmatprep.subr.bf16.mxu1 %v1292_v46 }
 0x747   :  { %1295 = vmatpush3.bf16.msra.mxu1 %v1292_v46 }
 0x74a   :  { %1249 = vmatmul.mubr.msk.f32.vlgmr.msra.gmra.mrb[10].mxu1 %vm393_vm2, %v1537_v63 }
 0x81d   :  { %v1250_v49 = vpop.f32.mrb[10].mxu1 }
 0x81e   :  { %929 = vrot.lane.b32.xlu0 %v1250_v49, %s1374_s4  ;;  %v916_v50 = vpop.f32.mrb[11].mxu1 }
 0x81f   :  { %927 = vrot.lane.b32.xlu1 %v916_v50, %s1374_s4 }
 0x822   :  { %1051 = vrot.lane.b32.xlu0 %v1040_v48, %s1374_s4 }
 0x823   :  { %940 = vrot.lane.b32.xlu1 %v1122_v51, %s1374_s4 }
 0x827   :  { %1053 = vrot.lane.b32.xlu1 %v1255_v47, %s1374_s4 }
 0x890   :  { %v930_v52 = vpop.permute.xlu0 %929 }
 0x891   :  { %v928_v63 = vpop.permute.xlu1 %927  ;;  %v934_v53 = vadd.f32 %v1573_v58, %v930_v52 }
 0x892   :  { %v933_v54 = vadd.f32 %v928_v63, %v1575_v59 }
 0x894   :  { %v1052_v24 = vpop.permute.xlu0 %1051 }
 0x895   :  { %v941_v55 = vpop.permute.xlu1 %940 }
 0x896   :  { %v943_v56 = vadd.f32 %v941_v55, %v933_v54  ;;  %v944_v57 = vadd.f32 %v941_v55, %v934_v53 }
 0x898   :  { %v945_v60 = vsel %vm495_vm3, %v943_v56, 0.0  ;;  %v946_v61 = vsel %vm495_vm3, %v944_v57, 0.0 }
 0x899   :  { %v947_v4 = vadd.f32 %v946_v61, %v945_v60  ;;  %v1054_v25 = vpop.permute.xlu1 %1053 }
 0x89b   :  { %v948_v62 = vrot.slane %v947_v4, 4 }
 0x89d   :  { %v949_v0 = vadd.f32 %v948_v62, %v947_v4 }
 0x89f   :  { %v950_v7 = vrot.slane %v949_v0, 2 }
 0x8a1   :  { %v951_v9 = vadd.f32 %v950_v7, %v949_v0 }
 0x8a3   :  { %v952_v1 = vrot.slane %v951_v9, 1 }
 0x8a5   :  { %v953_v10 = vadd.f32 %v952_v1, %v951_v9 }
 0x8a7   :  { %v954_v11 = vmul.f32 0.0625, %v953_v10 }
 0x8a9   :  { %v955_v8 = vsub.f32 %v943_v56, %v954_v11  ;;  %v956_v12 = vsub.f32 %v944_v57, %v954_v11 }
 0x8ab   :  { %v957_v58 = vmul.f32 %v955_v8, %v955_v8  ;;  %v958_v3 = vmul.f32 %v956_v12, %v956_v12 }
 0x8ad   :  { %v959_v59 = vsel %vm495_vm3, %v957_v58, 0.0  ;;  %v960_v16 = vsel %vm495_vm3, %v958_v3, 0.0 }
 0x8ae   :  { %v961_v17 = vadd.f32 %v960_v16, %v959_v59 }
 0x8b0   :  { %v962_v18 = vrot.slane %v961_v17, 4 }
 0x8b2   :  { %v963_v23 = vadd.f32 %v962_v18, %v961_v17 }
 0x8b4   :  { %v964_v13 = vrot.slane %v963_v23, 2 }
 0x8b6   :  { %v965_v14 = vadd.f32 %v964_v13, %v963_v23 }
 0x8b8   :  { %v966_v15 = vrot.slane %v965_v14, 1 }
 0x8ba   :  { %v967_v19 = vadd.f32 %v966_v15, %v965_v14 }
 0x8bc   :  { %v968_v20 = vmul.f32 0.0625, %v967_v19 }
 0x8be   :  { %v969_v21 = vadd.f32 1e-05, %v968_v20 }
 0x8c0   :  { %1346 = vrsqrt.f32 %v969_v21 }
 0x8ca   :  { %v1347_v22 = vpop.eup %1346 }
 0x8cb   :  { %v971_v26 = vmul.f32 %v1347_v22, %v955_v8  ;;  %v972_v2 = vmul.f32 %v1347_v22, %v956_v12 }
 0x8cd   :  { %v1057_v27 = vadd.f32 %v1052_v24, %v971_v26  ;;  %v1058_v28 = vadd.f32 %v1054_v25, %v972_v2 }
 0x8cf   :  { %v1059_v29 = vmax.f32 %v1057_v27, 0.0  ;;  %v1060_v30 = vmax.f32 %v1058_v28, 0.0 }
 0x8d1   :  { %1063 = vrot.lane.b32.xlu0 %v1059_v29, %s1373_s2  ;;  %1065 = vrot.lane.b32.xlu1 %v1060_v30, %s1373_s2 }
 0x943   :  { %v1064_v31 = vpop.permute.xlu0 %1063  ;;  %v1066_v32 = vpop.permute.xlu1 %1065 }
 0x944   :  { %1069 = vst.msk [vmem:[#allocation2] sm:$0xff] %vm393_vm2, %v1064_v31  ;;  %1070 = vst.msk [vmem:[#allocation2 + $0x8] sm:$0xff] %vm393_vm2, %v1066_v32 }
 0x945   :  { %1359 = shalt.err (!%p1356_p4)
}
 0x946   :  { %s1360_s17 = scalar_lea.hbm %s1653_s11, 256 }
 0x947   :  { %p1361_p5 = scmp.ne.s32.totalorder %s1653_s11, %s1360_s17  ;;  %p1364_p6 = scmp.lt.u32.totalorder %s1360_s17, %s1653_s11 }
 0x949   :  { %p1366_p7 = pnand %p1364_p6, %p1361_p5 }
 0x94b   :  { %1369 = shalt.err (!%p1366_p7)
}
 0x94c   :  { %s1376_s21 = smov 128   ;;  %s1377_s5 = smov 8  }
 0x94d   :  { %1082 = dma.vmem_to_hbm [thread:$0]  %s1077_s14, 256, %s1653_s11, [#allocation3], %s1376_s21, %s1376_s21, %s1377_s5  }
 0x94e   :  { %1370 = dma.done.wait [#allocation3], 256  }
 0x94f   :  { %1371 = vsyncadd [#allocation3], 4294967040 }
 0x950   :  { %1086 = vsyncpa [#allocation3], 1 }

</bundles_post_ra>
